<compile_context>
chip_gen: v5e
topology: v5e:2x2
jax: 0.10.0
libtpu: 0.0.40
codegen_flags: <defaults>
</compile_context>

<pallas_src>
import functools

import jax
import jax.numpy as jnp
import numpy as np
from jax import lax
from jax.experimental import pallas as pl
from jax.experimental.pallas import tpu as pltpu

_SUBLANES = 8  # f32 sublane quantum; scaled up for packed dtypes below


def _chip_budget():
    """(block_bytes, vmem_limit_bytes) tuned per TPU generation."""
    try:
        kind = jax.devices()[0].device_kind.lower()
    except Exception:  # pragma: no cover - defensive; fall back to v7x budget
        kind = ""
    if "v5" in kind or "v6" in kind:
        # 128 MiB VMEM: bigger blocks amortize the ~0.35 us per-grid-step cost.
        return 8 * 1024 * 1024, 64 * 1024 * 1024
    # v7x (64 MiB VMEM/TC) and unknown chips: 4 MiB blocks, 32 MiB scoped limit
    # (in+out double-buffered = 4 blocks = 16 MiB, comfortable headroom).
    return 4 * 1024 * 1024, 32 * 1024 * 1024


def _row_tile(m, t, itemsize, block_bytes):
    """Row-tile size: dtype-aware sublane quantum, ~block_bytes per block,
    and >= 2 grid steps when possible (dual-TC sharding on v7x)."""
    quantum = _SUBLANES * max(1, 4 // itemsize)   # 8 / 16 / 32 sublanes
    target = (block_bytes // max(1, t * itemsize)) // quantum * quantum
    target = max(quantum, target)
    if target >= m:
        if m >= 2 * quantum:
            half = -(-m // 2)                      # ceil(m / 2)
            return -(-half // quantum) * quantum   # round up to quantum
        return m                                   # full-extent block is legal
    return target


def _timeflip_kernel(start_ref, x_ref, o_ref, *, length):
    """out = x, except columns [start, start+length) reversed.

    Only core ops: iota / compare / select / static-shift roll (slice+concat).
    `start` is a runtime SMEM scalar; `length` is a static module constant.
    """
    start = start_ref[0]
    x = x_ref[...]
    t_len = x.shape[-1]
    col = lax.broadcasted_iota(jnp.int32, (1, t_len), 1)  # one lane-row, bcast
    out = x
    for j in range(length):                       # static unroll (length const)
        shift = 2 * j - (length - 1)              # dst - src, compile-time const
        if shift == 0:
            continue                              # middle column maps to itself
        # Static roll lowers to slice + concatenate (pure data movement on
        # load/store/XLU slots -> free under the HBM-bound copy).
        shifted = jnp.roll(x, shift, axis=-1)     # shifted[i] = x[i - shift]
        out = jnp.where(col == start + j, shifted, out)
    o_ref[...] = out


@functools.lru_cache(maxsize=None)
def _build_forward(shape, dtype_name, length):
    """One jitted forward per (shape, dtype, length); `start` stays runtime."""
    dtype = jnp.dtype(dtype_name)
    t = int(shape[-1])
    lead = shape[:-1]
    m = int(np.prod(lead, dtype=np.int64)) if lead else 1

    block_bytes, vmem_limit = _chip_budget()
    tm = _row_tile(m, t, dtype.itemsize, block_bytes)
    grid = (pl.cdiv(m, tm),)

    # index_map receives the scalar-prefetch ref as a trailing positional arg.
    spec = pl.BlockSpec((tm, t), lambda i, start_ref: (i, 0))

    call = pl.pallas_call(
        functools.partial(_timeflip_kernel, length=length),
        out_shape=jax.ShapeDtypeStruct((m, t), dtype),
        grid_spec=pltpu.PrefetchScalarGridSpec(
            num_scalar_prefetch=1,          # `start` -> SMEM scalar
            grid=grid,                      # row tiles of M = prod(leading dims)
            in_specs=[spec],
            out_specs=spec,
        ),
        compiler_params=pltpu.CompilerParams(
            dimension_semantics=("parallel",),   # dual-TC on v7x; no-op v5e/v6e
            vmem_limit_bytes=vmem_limit,
        ),
        cost_estimate=pl.CostEstimate(
            flops=0,
            transcendentals=0,
            bytes_accessed=2 * m * t * dtype.itemsize,
        ),
    )

    def fwd(start_arr, x):
        out2d = call(start_arr, x.reshape(m, t))
        return out2d.reshape(shape)

    return jax.jit(fwd)


def time_flip(x, start, length):
    """Pallas TimeFlip forward. x: (..., T); start, length: host-side ints."""
    length = int(round(length))
    if length <= 1:
        return x                                   # module is the identity here
    start = int(start)
    t = int(x.shape[-1])
    if not (0 <= start and start + length <= t):
        raise ValueError(f"invalid segment: start={start} length={length} T={t}")

    fwd = _build_forward(tuple(int(d) for d in x.shape), jnp.dtype(x.dtype).name,
                         length)
    start_arr = jnp.asarray([start], dtype=jnp.int32)
    return fwd(start_arr, x)


def time_flip_reference(x, start, length):
    """Pure-JAX reference mirroring the PyTorch forward."""
    length = int(round(length))
    if length <= 1:
        return x
    seg = x[..., start:start + length]
    return x.at[..., start:start + length].set(seg[..., ::-1])


if __name__ == "__main__":
    B, C, T = 2, 4, 16
    length = 5

    key = jax.random.PRNGKey(0)
    x = jax.random.normal(key, (B, C, T), dtype=jnp.float32)

    # TODO(synk): the module draws `start` with host-side stateful
    # np.random.randint each forward; the host RNG stays on the host (drawn
    # deterministically here) and is fed to the kernel via scalar prefetch.
    start = int(np.random.default_rng(0).integers(0, T - length))

    out = jax.block_until_ready(time_flip(x, start, length))
    ref = time_flip_reference(x, start, length)
    assert out.shape == x.shape and out.dtype == x.dtype
    np.testing.assert_allclose(np.asarray(out), np.asarray(ref), rtol=0, atol=0)

    # A different start reuses the cached executable (no retrace/recompile).
    out2 = jax.block_until_ready(time_flip(x, 2, length))
    ref2 = time_flip_reference(x, 2, length)
    np.testing.assert_allclose(np.asarray(out2), np.asarray(ref2), rtol=0, atol=0)

    # length <= 1 path must be the identity.
    np.testing.assert_allclose(np.asarray(time_flip(x, 0, 1)), np.asarray(x))

    print("KERNEL_OK")
</pallas_src>

<mosaic_0001>
module attributes {stable_mosaic.version = 11 : i64} {
  func.func @_timeflip_kernel(%arg0: i32, %arg1: memref<1xi32, #tpu.memory_space<smem>>, %arg2: memref<8x16xf32, #tpu.memory_space<vmem>>, %arg3: memref<8x16xf32, #tpu.memory_space<vmem>>) attributes {dimension_semantics = [#tpu.dimension_semantics<parallel>], iteration_bounds = array<i64: 1>, scalar_prefetch = 1 : i64, scratch_operands = 0 : i64, tpu.core_type = #tpu.core_type<tc>, window_params = [{transform_indices = @transform_0, window_bounds = array<i64: 8, 16>}, {transform_indices = @transform_1, window_bounds = array<i64: 8, 16>}]} {
    %c0 = arith.constant 0 : index
    %0 = memref.load %arg1[%c0] : memref<1xi32, #tpu.memory_space<smem>>
    %c0_0 = arith.constant 0 : index
    %c0_1 = arith.constant 0 : index
    %1 = vector.load %arg2[%c0_0, %c0_1] : memref<8x16xf32, #tpu.memory_space<vmem>>, vector<8x16xf32>
    %2 = tpu.iota {dimensions = array<i32: 1>} : vector<1x16xi32>
    %3 = vector.extract_strided_slice %1 {offsets = [0, 4], sizes = [8, 12], strides = [1, 1]} : vector<8x16xf32> to vector<8x12xf32>
    %4 = vector.extract_strided_slice %1 {offsets = [0, 0], sizes = [8, 4], strides = [1, 1]} : vector<8x16xf32> to vector<8x4xf32>
    %5 = tpu.concatenate %3, %4 in 1 : vector<8x12xf32>, vector<8x4xf32> -> vector<8x16xf32>
    %c0_i32 = arith.constant 0 : i32
    %6 = arith.addi %0, %c0_i32 : i32
    %7 = vector.broadcast %6 : i32 to vector<1x16xi32>
    %8 = arith.cmpi eq, %2, %7 : vector<1x16xi32>
    %9 = vector.shape_cast %8 : vector<1x16xi1> to vector<1x16xi1>
    %10 = vector.broadcast %9 : vector<1x16xi1> to vector<8x16xi1>
    %11 = arith.select %10, %5, %1 : vector<8x16xi1>, vector<8x16xf32>
    %12 = vector.extract_strided_slice %1 {offsets = [0, 2], sizes = [8, 14], strides = [1, 1]} : vector<8x16xf32> to vector<8x14xf32>
    %13 = vector.extract_strided_slice %1 {offsets = [0, 0], sizes = [8, 2], strides = [1, 1]} : vector<8x16xf32> to vector<8x2xf32>
    %14 = tpu.concatenate %12, %13 in 1 : vector<8x14xf32>, vector<8x2xf32> -> vector<8x16xf32>
    %c1_i32 = arith.constant 1 : i32
    %15 = arith.addi %0, %c1_i32 : i32
    %16 = vector.broadcast %15 : i32 to vector<1x16xi32>
    %17 = arith.cmpi eq, %2, %16 : vector<1x16xi32>
    %18 = vector.shape_cast %17 : vector<1x16xi1> to vector<1x16xi1>
    %19 = vector.broadcast %18 : vector<1x16xi1> to vector<8x16xi1>
    %20 = arith.select %19, %14, %11 : vector<8x16xi1>, vector<8x16xf32>
    %21 = vector.extract_strided_slice %1 {offsets = [0, 14], sizes = [8, 2], strides = [1, 1]} : vector<8x16xf32> to vector<8x2xf32>
    %22 = vector.extract_strided_slice %1 {offsets = [0, 0], sizes = [8, 14], strides = [1, 1]} : vector<8x16xf32> to vector<8x14xf32>
    %23 = tpu.concatenate %21, %22 in 1 : vector<8x2xf32>, vector<8x14xf32> -> vector<8x16xf32>
    %c3_i32 = arith.constant 3 : i32
    %24 = arith.addi %0, %c3_i32 : i32
    %25 = vector.broadcast %24 : i32 to vector<1x16xi32>
    %26 = arith.cmpi eq, %2, %25 : vector<1x16xi32>
    %27 = vector.shape_cast %26 : vector<1x16xi1> to vector<1x16xi1>
    %28 = vector.broadcast %27 : vector<1x16xi1> to vector<8x16xi1>
    %29 = arith.select %28, %23, %20 : vector<8x16xi1>, vector<8x16xf32>
    %30 = vector.extract_strided_slice %1 {offsets = [0, 12], sizes = [8, 4], strides = [1, 1]} : vector<8x16xf32> to vector<8x4xf32>
    %31 = vector.extract_strided_slice %1 {offsets = [0, 0], sizes = [8, 12], strides = [1, 1]} : vector<8x16xf32> to vector<8x12xf32>
    %32 = tpu.concatenate %30, %31 in 1 : vector<8x4xf32>, vector<8x12xf32> -> vector<8x16xf32>
    %c4_i32 = arith.constant 4 : i32
    %33 = arith.addi %0, %c4_i32 : i32
    %34 = vector.broadcast %33 : i32 to vector<1x16xi32>
    %35 = arith.cmpi eq, %2, %34 : vector<1x16xi32>
    %36 = vector.shape_cast %35 : vector<1x16xi1> to vector<1x16xi1>
    %37 = vector.broadcast %36 : vector<1x16xi1> to vector<8x16xi1>
    %38 = arith.select %37, %32, %29 : vector<8x16xi1>, vector<8x16xf32>
    %c0_2 = arith.constant 0 : index
    %c0_3 = arith.constant 0 : index
    %39 = vector.load %arg3[%c0_2, %c0_3] : memref<8x16xf32, #tpu.memory_space<vmem>>, vector<8x16xf32>
    tpu.vector_store %arg3[%c0_2, %c0_3], %38 {strides = array<i32>} : memref<8x16xf32, #tpu.memory_space<vmem>>, vector<8x16xf32>,
    return
  }
  func.func @transform_0(%arg0: i32, %arg1: memref<1xi32, #tpu.memory_space<smem>>) -> (i32, i32) {
    %c0_i32 = arith.constant 0 : i32
    %c0_i32_0 = arith.constant 0 : i32
    return %arg0, %c0_i32 : i32, i32
  }
  func.func @transform_1(%arg0: i32, %arg1: memref<1xi32, #tpu.memory_space<smem>>) -> (i32, i32) {
    %c0_i32 = arith.constant 0 : i32
    %c0_i32_0 = arith.constant 0 : i32
    return %arg0, %c0_i32 : i32, i32
  }
}

</mosaic_0001>

<bundles_post_ra>
// kernel: fwd.1
= control target key start
LH: loop header
LB: loop body
LE: loop exit
PB: predicated region body
PF: predicated region fallthrough
CT: control target
= control target key end

     0   :  { %8 = vsyncpa [#allocation5], 0  ;;  %s209_s0 = inlined_call_operand.<no memory space> [shape: s32[1], index: 0, kind: input, shape index: {}]   ;;  %s210_s1 = inlined_call_operand.hbm [shape: f32[8,16], index: 1, kind: input, shape index: {}]   ;;  %s211_s2 = inlined_call_operand.hbm [shape: f32[8,16], index: 2, kind: output, shape index: {}]  }
   0x1   :  { %9 = vsyncpa [#allocation6], 0  ;;  %s15_s11 = sshll.u32 %s210_s1, 4  ;;  %s166_s12 = smov [#allocation4]   ;;  %s16_s11 = int_to_ptr.hbm [resolvable:$true] %s15_s11 }
   0x2   :  { %s17_s13 = sshll.u32 %s166_s12, 4  ;;  %s18_s13 = int_to_ptr.vmem [resolvable:$true] %s17_s13 }
   0x3   :  { %20 = dma.hbm_to_vmem [thread:$0]  %s16_s11, 128, %s18_s13, [#allocation5]  }
   0x4   :  { %162 = dma.done.wait [#allocation5], 128  }
   0x5   :  { %163 = vsyncadd [#allocation5], 4294967168  ;;  %v26_v0 = vld [vmem:[#allocation4] sm:$0xff]  ;;  %s167_s14 = smov 126   ;;  %s168_s15 = smov 124   ;;  %v27_v3 = vlaneseq  ;;  %v38_v6 = vstv %s209_s0  ;;  %vm36_vm0 = vcmask 97280  }
   0x6   :  { %43 = vrot.lane.b32.xlu1 %v26_v0, %s167_s14  ;;  %30 = vrot.lane.b32.xlu0 %v26_v0, %s168_s15  ;;  %s169_s16 = smov 114   ;;  %s170_s17 = smov 14   ;;  %vm49_vm1 = vcmask 113664   ;;  %vm63_vm4 = vcmask 15360   ;;  %vm77_vm6 = vcmask 31744   ;;  %vm85_vm8 = vcmask 130048  }
   0x7   :  { %57 = vrot.lane.b32.xlu2 %v26_v0, %s169_s16  ;;  %s171_s18 = smov 12   ;;  %s172_s19 = smov 2   ;;  %v28_v5 = vand.u32 127, %v27_v3 }
   0x8   :  { %s173_s1 = smov 4   ;;  %s174_s20 = smov 116  }
   0x9   :  { %s51_s25 = sadd.s32 1, %s209_s0  ;;  %vm39_vm2 = vcmp.eq.s32.totalorder %v28_v5, %v38_v6  ;;  %s65_s28 = sadd.s32 3, %s209_s0 }
   0xa   :  { %v52_v8 = vstv %s51_s25  ;;  %s79_s3 = sadd.s32 4, %s209_s0  ;;  %v66_v13 = vstv %s65_s28  ;;  %s175_s4 = smov [#allocation7]  }
   0xb   :  { %vm53_vm3 = vcmp.eq.s32.totalorder %v28_v5, %v52_v8  ;;  %v80_v14 = vstv %s79_s3  ;;  %vm67_vm5 = vcmp.eq.s32.totalorder %v28_v5, %v66_v13  ;;  %s92_s5 = sshll.u32 %s175_s4, 4  ;;  %s94_s8 = sshll.u32 %s211_s2, 4  ;;  %s93_s5 = int_to_ptr.vmem [resolvable:$true] %s92_s5  ;;  %s95_s8 = int_to_ptr.hbm [resolvable:$true] %s94_s8 }
   0xc   :  { %vm81_vm7 = vcmp.eq.s32.totalorder %v28_v5, %v80_v14 }
   0xe   :  { %46 = vrot.lane.b32.xlu1 %v26_v0, %s170_s17  ;;  %33 = vrot.lane.b32.xlu0 %v26_v0, %s171_s18 }
   0xf   :  { %60 = vrot.lane.b32.xlu2 %v26_v0, %s172_s19 }
  0x16   :  { %74 = vrot.lane.b32.xlu1 %v26_v0, %s173_s1  ;;  %71 = vrot.lane.b32.xlu0 %v26_v0, %s174_s20 }
  0x61   :  { %v58_v4 = vpop.permute.xlu2 %57 }
  0x69   :  { %v61_v15 = vpop.permute.xlu2 %60 }
  0x6a   :  { %v64_v17 = vsel %vm63_vm4, %v58_v4, %v61_v15 }
  0x78   :  { %v44_v1 = vpop.permute.xlu1 %43  ;;  %v31_v2 = vpop.permute.xlu0 %30 }
  0x80   :  { %v47_v7 = vpop.permute.xlu1 %46  ;;  %v34_v9 = vpop.permute.xlu0 %33 }
  0x81   :  { %v37_v10 = vsel %vm36_vm0, %v31_v2, %v34_v9  ;;  %v50_v11 = vsel %vm49_vm1, %v44_v1, %v47_v7 }
  0x82   :  { %v42_v12 = vsel %vm39_vm2, %v37_v10, %v26_v0 }
  0x83   :  { %v56_v16 = vsel %vm53_vm3, %v50_v11, %v42_v12 }
  0x84   :  { %v70_v20 = vsel %vm67_vm5, %v64_v17, %v56_v16 }
  0x88   :  { %v75_v18 = vpop.permute.xlu1 %74  ;;  %v72_v19 = vpop.permute.xlu0 %71 }
  0x89   :  { %v78_v21 = vsel %vm77_vm6, %v72_v19, %v75_v18 }
  0x8a   :  { %v84_v22 = vsel %vm81_vm7, %v78_v21, %v70_v20 }
  0x8b   :  { %86 = vst.msk [vmem:[#allocation7] sm:$0xff] %vm85_vm8, %v84_v22 }
  0x8c   :  { %97 = dma.vmem_to_hbm [thread:$0]  %s93_s5, 128, %s95_s8, [#allocation6]  }
  0x8d   :  { %164 = dma.done.wait [#allocation6], 128  }
  0x8e   :  { %165 = vsyncadd [#allocation6], 4294967168 }
  0x8f   :  { %102 = vsyncpa [#allocation5], 1 }
  0x90   :  { %103 = vsyncpa [#allocation6], 1 }

</bundles_post_ra>
